<compile_context>
chip_gen: v6e
topology: v6e:2x2x1
jax: 0.10.0
libtpu: 0.0.40
codegen_flags: <defaults>
</compile_context>

<pallas_src>
import jax
import jax.numpy as jnp
from jax.experimental import pallas as pl
from jax.experimental.pallas import tpu as pltpu


def _round_up(n, m):
    return ((n + m - 1) // m) * m


def _pad_dim(n):
    """Lane-dense padding: 128-multiple; prefer 256-multiples (v6e MXU) when > 128."""
    p = _round_up(n, 128)
    if p > 128:
        p = _round_up(p, 256)
    return p


def _vmem_capacity_bytes():
    """Per-TensorCore VMEM capacity; conservative (v7x) fallback if unqueryable."""
    try:
        info = pltpu.get_tpu_info()
        for name in ("vmem_capacity_bytes", "vmem_size_bytes", "vmem_bytes"):
            cap = getattr(info, name, None)
            if cap:
                return int(cap)
    except Exception:
        pass
    return 64 << 20  # v7x has the smallest VMEM (64 MiB); safe on v5e/v6e too.


# --------------------------------------------------------------------------------------
# Kernels
# --------------------------------------------------------------------------------------
def ffn_resident_kernel(x_ref, w1_ref, b1_ref, w2_ref, b2_ref, o_ref):
    """Full FFN for one row tile; W1/W2 held resident in VMEM (constant index_map)."""
    h = jnp.dot(x_ref[...], w1_ref[...], preferred_element_type=jnp.float32)
    h = jnp.maximum(h + b1_ref[...], 0.0)                      # bias + ReLU in f32
    # Dropout: inference-mode identity (nn.Dropout is a no-op in eval mode).
    out = jnp.dot(h.astype(w2_ref.dtype), w2_ref[...],
                  preferred_element_type=jnp.float32)
    o_ref[...] = (out + b2_ref[...]).astype(o_ref.dtype)


def ffn_chunked_kernel(x_ref, w1_ref, b1_ref, w2_ref, b2_ref, o_ref, acc_ref):
    """One (row-tile, d_ff-chunk) step of out = relu(x @ W1 + b1) @ W2 + b2."""
    k = pl.program_id(1)

    @pl.when(k == 0)
    def _init():
        acc_ref[...] = jnp.zeros_like(acc_ref)

    # Linear1 (this d_ff chunk) + bias + ReLU.  ReLU is elementwise over d_ff, so
    # applying it per-chunk before the second matmul is exact.
    h = jnp.dot(x_ref[...], w1_ref[...], preferred_element_type=jnp.float32)
    h = jnp.maximum(h + b1_ref[...], 0.0)

    # Dropout: inference-mode identity (eval mode).
    # Partial Linear2 contribution from this d_ff chunk, accumulated in f32.
    acc_ref[...] += jnp.dot(h.astype(w2_ref.dtype), w2_ref[...],
                            preferred_element_type=jnp.float32)

    @pl.when(k == pl.num_programs(1) - 1)
    def _finalize():
        o_ref[...] = (acc_ref[...] + b2_ref[...]).astype(o_ref.dtype)


# --------------------------------------------------------------------------------------
# Wrapper
# --------------------------------------------------------------------------------------
def prepare_ffn_params(w1, b1, w2, b2, *, compute_dtype=jnp.bfloat16):
    """Pad + cast the FFN weights ONCE at setup time (not per forward call).

    w1: (d_model, d_ff), b1: (d_ff,), w2: (d_ff, d_model), b2: (d_model,)
    Weights go to the MXU compute dtype (bf16 by default; fp8 on v7x if quality allows);
    biases stay f32 and are added to the f32 accumulators inside the kernel.
    """
    d_model, d_ff = w1.shape
    assert w2.shape == (d_ff, d_model)
    d_model_p = _pad_dim(d_model)
    d_ff_p = _pad_dim(d_ff)

    w1_p = jnp.pad(w1, ((0, d_model_p - d_model), (0, d_ff_p - d_ff))).astype(compute_dtype)
    w2_p = jnp.pad(w2, ((0, d_ff_p - d_ff), (0, d_model_p - d_model))).astype(compute_dtype)
    b1_p = jnp.pad(b1, (0, d_ff_p - d_ff)).astype(jnp.float32).reshape(1, d_ff_p)
    b2_p = jnp.pad(b2, (0, d_model_p - d_model)).astype(jnp.float32).reshape(1, d_model_p)

    return dict(w1=w1_p, b1=b1_p, w2=w2_p, b2=b2_p,
                d_model=d_model, d_ff=d_ff,
                d_model_p=d_model_p, d_ff_p=d_ff_p,
                compute_dtype=compute_dtype)


def feed_forward(x, params, *, tile_m=512, tile_f=1024, training=False, force_chunked=False):
    """x: (batch, seq, d_model) -> (batch, seq, d_model).  Eval-mode forward only."""
    # TODO(synk): training-mode dropout would use pltpu.prng_seed + pltpu.prng_random_bits.
    assert not training, "training-mode dropout is not implemented (eval-mode identity only)"

    batch, seq, d_model = x.shape
    assert d_model == params["d_model"]
    d_ff = params["d_ff"]
    d_model_p, d_ff_p = params["d_model_p"], params["d_ff_p"]
    cdt = params["compute_dtype"]
    csz = jnp.dtype(cdt).itemsize
    osz = jnp.dtype(x.dtype).itemsize
    M = batch * seq

    vmem_cap = _vmem_capacity_bytes()
    budget = int(vmem_cap * 0.80)  # headroom for compiler temporaries / spill

    # Row tile: multiple of 8, no larger than (sublane-padded) M.
    tile_m = max(8, min(_round_up(tile_m, 8), _round_up(M, 8)))

    # ---- resident-weights fast path: weights DMA'd once, no per-k accumulator RMW ----
    weight_bytes = (2 * (d_model_p * d_ff_p + d_ff_p * d_model_p) * csz   # W1 + W2 (2x buffered)
                    + 2 * 8 * (d_ff_p + d_model_p) * 4)                   # biases (f32)

    def resident_ws(tm):
        return (weight_bytes
                + 2 * tm * d_model_p * csz      # x row tile (double buffered)
                + 2 * tm * d_model_p * osz      # out row tile
                + tm * d_ff_p * 4               # f32 hidden-activation temp
                + tm * d_model_p * 4)           # f32 output temp

    tm_res = tile_m
    while resident_ws(tm_res) > budget and tm_res > 128:
        tm_res //= 2
    use_resident = (not force_chunked) and resident_ws(tm_res) <= budget

    if use_resident:
        tile_m = tm_res
        M_p = _round_up(M, tile_m)
        n_m = M_p // tile_m          # NOTE (v7x): even n_m balances the 2 TensorCores.
        ws = resident_ws(tile_m)
        kernel = ffn_resident_kernel
        dim_sem = ("parallel",)
        grid_spec = pltpu.PrefetchScalarGridSpec(
            num_scalar_prefetch=0,
            grid=(n_m,),
            in_specs=[
                pl.BlockSpec((tile_m, d_model_p), lambda i: (i, 0)),   # x row tile
                pl.BlockSpec((d_model_p, d_ff_p), lambda i: (0, 0)),   # W1 (resident)
                pl.BlockSpec((1, d_ff_p),         lambda i: (0, 0)),   # b1
                pl.BlockSpec((d_ff_p, d_model_p), lambda i: (0, 0)),   # W2 (resident)
                pl.BlockSpec((1, d_model_p),      lambda i: (0, 0)),   # b2
            ],
            out_specs=pl.BlockSpec((tile_m, d_model_p), lambda i: (i, 0)),
        )
    else:
        # ---- chunked d_ff reduction (streamed W1/W2 chunks, f32 VMEM accumulator) ----
        tile_f = max(128, min(_round_up(tile_f, 128), d_ff_p))
        while d_ff_p % tile_f != 0:          # keep weight padding fixed (no per-call pads)
            tile_f -= 128

        def chunked_ws(tm, tf):
            return (2 * tm * d_model_p * csz          # x tile
                    + 2 * d_model_p * tf * csz        # W1 chunk
                    + 2 * 8 * tf * 4                  # b1 chunk (f32, sublane-padded)
                    + 2 * tf * d_model_p * csz        # W2 chunk
                    + 2 * 8 * d_model_p * 4           # b2 (f32)
                    + 2 * tm * d_model_p * osz        # out tile
                    + tm * d_model_p * 4              # f32 accumulator scratch
                    + tm * tf * 4)                    # f32 hidden temp

        while chunked_ws(tile_m, tile_f) > budget and tile_f > 128:
            tile_f = max(128, (tile_f // 2 // 128) * 128)
        while chunked_ws(tile_m, tile_f) > budget and tile_m > 128:
            tile_m //= 2
        while d_ff_p % tile_f != 0:
            tile_f -= 128

        M_p = _round_up(M, tile_m)
        n_m = M_p // tile_m
        n_f = d_ff_p // tile_f
        ws = chunked_ws(tile_m, tile_f)
        kernel = ffn_chunked_kernel
        dim_sem = ("parallel", "arbitrary")
        grid_spec = pltpu.PrefetchScalarGridSpec(
            num_scalar_prefetch=0,
            grid=(n_m, n_f),                                            # reduction axis last
            in_specs=[
                pl.BlockSpec((tile_m, d_model_p), lambda i, k: (i, 0)),  # x row tile
                # TODO(synk): sweep pipeline_mode=pl.Buffered(3) on W1/W2 chunks (few-% DMA win).
                pl.BlockSpec((d_model_p, tile_f), lambda i, k: (0, k)),  # W1 chunk
                pl.BlockSpec((1, tile_f),         lambda i, k: (0, k)),  # b1 chunk
                pl.BlockSpec((tile_f, d_model_p), lambda i, k: (k, 0)),  # W2 chunk
                pl.BlockSpec((1, d_model_p),      lambda i, k: (0, 0)),  # b2
            ],
            out_specs=pl.BlockSpec((tile_m, d_model_p), lambda i, k: (i, 0)),
            scratch_shapes=[pltpu.VMEM((tile_m, d_model_p), jnp.float32)],
        )

    # ---- input staging: pad only when needed, cast to the MXU compute dtype ----
    x2d = x.reshape(M, d_model)
    if M_p != M or d_model_p != d_model:
        x2d = jnp.pad(x2d, ((0, M_p - M), (0, d_model_p - d_model)))
    x2d = x2d.astype(cdt)

    # VMEM limit: enough for the working set, clamped to the chip's physical capacity.
    vmem_limit = int(min(max(int(1.3 * ws) + (2 << 20), 32 << 20), int(0.9 * vmem_cap)))

    cost = pl.CostEstimate(
        flops=4 * M * d_model * d_ff,                       # two matmuls, 2 flops/MAC
        transcendentals=0,
        bytes_accessed=(M * d_model * csz + 2 * d_model * d_ff * csz
                        + (d_ff + d_model) * 4 + M * d_model * osz),
    )

    out2d = pl.pallas_call(
        kernel,
        out_shape=jax.ShapeDtypeStruct((M_p, d_model_p), x.dtype),
        grid_spec=grid_spec,
        compiler_params=pltpu.CompilerParams(
            dimension_semantics=dim_sem,
            vmem_limit_bytes=vmem_limit,
        ),
        cost_estimate=cost,
    )(x2d, params["w1"], params["b1"], params["w2"], params["b2"])

    return out2d[:M, :d_model].reshape(batch, seq, d_model)


if __name__ == "__main__":
    # Small shapes consistent with the module: batch=2, seq=8, d_model=32, d_ff=64.
    batch, seq, d_model, d_ff = 2, 8, 32, 64
    key = jax.random.PRNGKey(0)
    kx, kw1, kb1, kw2, kb2 = jax.random.split(key, 5)

    x = jax.random.normal(kx, (batch, seq, d_model), dtype=jnp.float32)
    # PyTorch nn.Linear stores weight as (out, in) and does x @ W.T + b;
    # here we store the already-transposed (in, out) matrices.
    w1 = jax.random.normal(kw1, (d_model, d_ff), dtype=jnp.float32) * 0.05
    b1 = jax.random.normal(kb1, (d_ff,), dtype=jnp.float32) * 0.05
    w2 = jax.random.normal(kw2, (d_ff, d_model), dtype=jnp.float32) * 0.05
    b2 = jax.random.normal(kb2, (d_model,), dtype=jnp.float32) * 0.05

    # --- resident-weights fast path (default) ---
    params = prepare_ffn_params(w1, b1, w2, b2)   # pad + cast once at setup
    out = feed_forward(x, params)
    jax.block_until_ready(out)

    ref = jnp.maximum(x @ w1 + b1, 0.0) @ w2 + b2
    assert out.shape == (batch, seq, d_model)
    # bf16 operands / f32 accumulation -> looser tolerance than a pure-f32 reference.
    err = float(jnp.max(jnp.abs(out - ref)))
    assert jnp.allclose(out, ref, atol=2e-2, rtol=2e-2), err

    # --- chunked-reduction fallback path (forced, larger d_ff, 2 k-steps) ---
    d_ff2 = 256
    kw1b, kw2b, kb1b = jax.random.split(kw1, 3)
    w1b = jax.random.normal(kw1b, (d_model, d_ff2), dtype=jnp.float32) * 0.05
    b1b = jax.random.normal(kb1b, (d_ff2,), dtype=jnp.float32) * 0.05
    w2b = jax.random.normal(kw2b, (d_ff2, d_model), dtype=jnp.float32) * 0.05
    params_b = prepare_ffn_params(w1b, b1b, w2b, b2)
    out_b = feed_forward(x, params_b, tile_f=128, force_chunked=True)
    jax.block_until_ready(out_b)
    ref_b = jnp.maximum(x @ w1b + b1b, 0.0) @ w2b + b2
    err_b = float(jnp.max(jnp.abs(out_b - ref_b)))
    assert jnp.allclose(out_b, ref_b, atol=2e-2, rtol=2e-2), err_b

    print("KERNEL_OK")
</pallas_src>

<mosaic_0001>
module attributes {stable_mosaic.version = 11 : i64} {
  func.func @ffn_resident_kernel(%arg0: i32, %arg1: memref<16x128xbf16, #tpu.memory_space<vmem>>, %arg2: memref<128x128xbf16, #tpu.memory_space<vmem>>, %arg3: memref<1x128xf32, #tpu.memory_space<vmem>>, %arg4: memref<128x128xbf16, #tpu.memory_space<vmem>>, %arg5: memref<1x128xf32, #tpu.memory_space<vmem>>, %arg6: memref<16x128xf32, #tpu.memory_space<vmem>>) attributes {dimension_semantics = [#tpu.dimension_semantics<parallel>], iteration_bounds = array<i64: 1>, scalar_prefetch = 0 : i64, scratch_operands = 0 : i64, tpu.core_type = #tpu.core_type<tc>, window_params = [{transform_indices = @transform_0, window_bounds = array<i64: 16, 128>}, {pipeline_mode = #tpu.pipeline_mode<synchronous>, transform_indices = @transform_1, window_bounds = array<i64: 128, 128>}, {pipeline_mode = #tpu.pipeline_mode<synchronous>, transform_indices = @transform_2, window_bounds = array<i64: 1, 128>}, {pipeline_mode = #tpu.pipeline_mode<synchronous>, transform_indices = @transform_3, window_bounds = array<i64: 128, 128>}, {pipeline_mode = #tpu.pipeline_mode<synchronous>, transform_indices = @transform_4, window_bounds = array<i64: 1, 128>}, {transform_indices = @transform_5, window_bounds = array<i64: 16, 128>}]} {
    %c0 = arith.constant 0 : index
    %c0_0 = arith.constant 0 : index
    %0 = vector.load %arg1[%c0, %c0_0] : memref<16x128xbf16, #tpu.memory_space<vmem>>, vector<16x128xbf16>
    %c0_1 = arith.constant 0 : index
    %c0_2 = arith.constant 0 : index
    %1 = vector.load %arg2[%c0_1, %c0_2] : memref<128x128xbf16, #tpu.memory_space<vmem>>, vector<128x128xbf16>
    %cst = arith.constant dense<0.000000e+00> : vector<16x128xf32>
    %2 = tpu.matmul %0, %1, %cst {dimension_numbers = #tpu.dot_dimension_numbers<[1], [0], [0], [1], [0, 0, 1, 1], [], []>} : vector<16x128xbf16>, vector<128x128xbf16>, vector<16x128xf32> -> vector<16x128xf32>
    %c0_3 = arith.constant 0 : index
    %c0_4 = arith.constant 0 : index
    %3 = vector.load %arg3[%c0_3, %c0_4] : memref<1x128xf32, #tpu.memory_space<vmem>>, vector<1x128xf32>
    %4 = vector.broadcast %3 : vector<1x128xf32> to vector<16x128xf32>
    %5 = arith.addf %2, %4 : vector<16x128xf32>
    %cst_5 = arith.constant 0.000000e+00 : f32
    %6 = vector.broadcast %cst_5 : f32 to vector<16x128xf32>
    %7 = arith.maximumf %5, %6 : vector<16x128xf32>
    %8 = arith.truncf %7 : vector<16x128xf32> to vector<16x128xbf16>
    %c0_6 = arith.constant 0 : index
    %c0_7 = arith.constant 0 : index
    %9 = vector.load %arg4[%c0_6, %c0_7] : memref<128x128xbf16, #tpu.memory_space<vmem>>, vector<128x128xbf16>
    %cst_8 = arith.constant dense<0.000000e+00> : vector<16x128xf32>
    %10 = tpu.matmul %8, %9, %cst_8 {dimension_numbers = #tpu.dot_dimension_numbers<[1], [0], [0], [1], [0, 0, 1, 1], [], []>} : vector<16x128xbf16>, vector<128x128xbf16>, vector<16x128xf32> -> vector<16x128xf32>
    %c0_9 = arith.constant 0 : index
    %c0_10 = arith.constant 0 : index
    %11 = vector.load %arg5[%c0_9, %c0_10] : memref<1x128xf32, #tpu.memory_space<vmem>>, vector<1x128xf32>
    %12 = vector.broadcast %11 : vector<1x128xf32> to vector<16x128xf32>
    %13 = arith.addf %10, %12 : vector<16x128xf32>
    %c0_11 = arith.constant 0 : index
    %c0_12 = arith.constant 0 : index
    %14 = vector.load %arg6[%c0_11, %c0_12] : memref<16x128xf32, #tpu.memory_space<vmem>>, vector<16x128xf32>
    tpu.vector_store %arg6[%c0_11, %c0_12], %13 {strides = array<i32>} : memref<16x128xf32, #tpu.memory_space<vmem>>, vector<16x128xf32>,
    return
  }
  func.func @transform_0(%arg0: i32) -> (i32, i32) {
    %c0_i32 = arith.constant 0 : i32
    %c0_i32_0 = arith.constant 0 : i32
    return %arg0, %c0_i32 : i32, i32
  }
  func.func @transform_1(%arg0: i32) -> (i32, i32) {
    %c0_i32 = arith.constant 0 : i32
    %c0_i32_0 = arith.constant 0 : i32
    %c0_i32_1 = arith.constant 0 : i32
    return %c0_i32, %c0_i32_0 : i32, i32
  }
  func.func @transform_2(%arg0: i32) -> (i32, i32) {
    %c0_i32 = arith.constant 0 : i32
    %c0_i32_0 = arith.constant 0 : i32
    %c0_i32_1 = arith.constant 0 : i32
    return %c0_i32, %c0_i32_0 : i32, i32
  }
  func.func @transform_3(%arg0: i32) -> (i32, i32) {
    %c0_i32 = arith.constant 0 : i32
    %c0_i32_0 = arith.constant 0 : i32
    %c0_i32_1 = arith.constant 0 : i32
    return %c0_i32, %c0_i32_0 : i32, i32
  }
  func.func @transform_4(%arg0: i32) -> (i32, i32) {
    %c0_i32 = arith.constant 0 : i32
    %c0_i32_0 = arith.constant 0 : i32
    %c0_i32_1 = arith.constant 0 : i32
    return %c0_i32, %c0_i32_0 : i32, i32
  }
  func.func @transform_5(%arg0: i32) -> (i32, i32) {
    %c0_i32 = arith.constant 0 : i32
    %c0_i32_0 = arith.constant 0 : i32
    return %arg0, %c0_i32 : i32, i32
  }
}

</mosaic_0001>

<bundles_post_ra>
// kernel: tpu_custom_call.1
= control target key start
LH: loop header
LB: loop body
LE: loop exit
PB: predicated region body
PF: predicated region fallthrough
CT: control target
= control target key end

     0   :  { %10 = vsyncpa [#allocation3], 0  ;;  %s566_s0 = inlined_call_operand.hbm [shape: bf16[16,128], index: 0, kind: input, shape index: {}]   ;;  %s567_s1 = inlined_call_operand.hbm [shape: bf16[128,128], index: 1, kind: input, shape index: {}]   ;;  %s568_s2 = inlined_call_operand.vmem [shape: f32[1,128], index: 2, kind: input, shape index: {}]   ;;  %s569_s3 = inlined_call_operand.hbm [shape: bf16[128,128], index: 3, kind: input, shape index: {}]   ;;  %s570_s4 = inlined_call_operand.vmem [shape: f32[1,128], index: 4, kind: input, shape index: {}]   ;;  %s571_s5 = inlined_call_operand.hbm [shape: f32[16,128], index: 5, kind: output, shape index: {}]  }
   0x1   :  { %11 = vsyncpa [#allocation6], 0 }
   0x2   :  { %12 = vsyncpa [#allocation4], 0  ;;  %s508_s18 = smov [#allocation5]   ;;  %s509_s20 = smov [#allocation2]  }
   0x3   :  { %s30_s19 = sshll.u32 %s508_s18, 4  ;;  %s18_s21 = sshll.u32 %s509_s20, 4  ;;  %s31_s19 = int_to_ptr.vmem [resolvable:$true] %s30_s19  ;;  %s19_s21 = int_to_ptr.vmem [resolvable:$true] %s18_s21 }
   0x4   :  { %s430_s22 = scalar_lea.vmem %s31_s19, 1024  ;;  %p435_p1 = scmp.lt.s32.totalorder %s31_s19, %s31_s19 }
   0x5   :  { %p431_p0 = scmp.ne.s32.totalorder %s31_s19, %s430_s22  ;;  %p436_p2 = scmp.lt.s32.totalorder %s430_s22, %s430_s22 }
   0x7   :  { %p437_p3 = por %p436_p2, %p435_p1 }
   0x9   :  { %p438_p4 = pnand %p437_p3, %p431_p0 }
   0xb   :  { %441 = shalt.err (!%p438_p4)
}
   0xc   :  { %s510_s23 = smov 64   ;;  %s511_s24 = smov 4  }
   0xd   :  { %36 = dma.hbm_to_vmem [thread:$0]  %s567_s1, 1024, %s31_s19, [#allocation6], %s510_s23, %s510_s23, %s511_s24  }
   0xe   :  { %s450_s27 = scalar_lea.vmem %s19_s21, 128  ;;  %p455_p6 = scmp.lt.s32.totalorder %s19_s21, %s19_s21 }
   0xf   :  { %p451_p5 = scmp.ne.s32.totalorder %s19_s21, %s450_s27  ;;  %p456_p7 = scmp.lt.s32.totalorder %s450_s27, %s450_s27 }
  0x11   :  { %p457_p8 = por %p456_p7, %p455_p6 }
  0x13   :  { %p458_p9 = pnand %p457_p8, %p451_p5 }
  0x15   :  { %461 = shalt.err (!%p458_p9)
}
  0x16   :  { %24 = dma.hbm_to_vmem [thread:$0]  %s566_s0, 128, %s19_s21, [#allocation3], %s510_s23, %s510_s23, %s511_s24  }
  0x17   :  { %s512_s30 = smov [#allocation7]  }
  0x18   :  { %s44_s6 = sshll.u32 %s512_s30, 4  ;;  %s45_s6 = int_to_ptr.vmem [resolvable:$true] %s44_s6 }
  0x19   :  { %s470_s7 = scalar_lea.vmem %s45_s6, 1024  ;;  %p475_p11 = scmp.lt.s32.totalorder %s45_s6, %s45_s6 }
  0x1a   :  { %p471_p10 = scmp.ne.s32.totalorder %s45_s6, %s470_s7  ;;  %p476_p12 = scmp.lt.s32.totalorder %s470_s7, %s470_s7 }
  0x1c   :  { %p477_p13 = por %p476_p12, %p475_p11 }
  0x1e   :  { %p478_p0 = pnand %p477_p13, %p471_p10 }
  0x20   :  { %481 = shalt.err (!%p478_p0)
}
  0x21   :  { %50 = dma.hbm_to_vmem [thread:$0]  %s569_s3, 1024, %s45_s6, [#allocation6], %s510_s23, %s510_s23, %s511_s24  }
  0x22   :  { %502 = dma.done.wait [#allocation3], 128  }
  0x23   :  { %503 = vsyncadd [#allocation3], 4294967168 }
  0x24   :  { %504 = dma.done.wait [#allocation6], 2048  }
  0x25   :  { %505 = vsyncadd [#allocation6], 4294965248  ;;  %v513_v0 = vmov 0.0   ;;  %vm514_vm0 = vmmov 0   ;;  %v405_v1 = vld [vmem:[#allocation5 + $0x38] sm:$0xff]   ;;  %v406_v2 = vld [vmem:[#allocation5 + $0x30] sm:$0xff]  }
  0x26   :  { %355 = vmatprep.subr.bf16.mxu0 %v513_v0  ;;  %371 = vmatprep.mubr.msk.bf16.mxu0 %vm514_vm0, %v513_v0  ;;  %v407_v3 = vld [vmem:[#allocation5 + $0x28] sm:$0xff]   ;;  %v414_v4 = vld [vmem:[#allocation7 + $0x38] sm:$0xff]   ;;  %v408_v5 = vld [vmem:[#allocation5 + $0x20] sm:$0xff]   ;;  %s515_s11 = smov [#allocation8]  }
  0x27   :  { %375 = vmatprep.subr.bf16.mxu1 %v513_v0  ;;  %391 = vmatprep.mubr.msk.bf16.mxu1 %vm514_vm0, %v513_v0  ;;  %v415_v6 = vld [vmem:[#allocation7 + $0x30] sm:$0xff]   ;;  %v409_v7 = vld [vmem:[#allocation5 + $0x18] sm:$0xff]   ;;  %v416_v8 = vld [vmem:[#allocation7 + $0x28] sm:$0xff]   ;;  %s305_s12 = sshll.u32 %s515_s11, 4  ;;  %s306_s12 = int_to_ptr.vmem [resolvable:$true] %s305_s12 }
  0x28   :  { %356 = vmatpush3.bf16.msra.mxu0 %v405_v1  ;;  %376 = vmatpush3.bf16.msra.mxu1 %v414_v4  ;;  %v410_v9 = vld [vmem:[#allocation5 + $0x10] sm:$0xff]   ;;  %v417_v10 = vld [vmem:[#allocation7 + $0x20] sm:$0xff]   ;;  %v411_v11 = vld [vmem:[#allocation5 + $0x8] sm:$0xff]   ;;  %p487_p2 = scmp.lt.s32.totalorder %s306_s12, %s306_s12 }
  0x29   :  { %357 = vmatprep.subr.bf16.mxu0 %v513_v0  ;;  %377 = vmatprep.subr.bf16.mxu1 %v513_v0  ;;  %v418_v12 = vld [vmem:[#allocation7 + $0x18] sm:$0xff]   ;;  %v412_v13 = vld [vmem:[#allocation5] sm:$0xff]   ;;  %v419_v15 = vld [vmem:[#allocation7 + $0x10] sm:$0xff]  }
  0x2a   :  { %v413_v14 = vld [vmem:[#allocation2] sm:$0xff]   ;;  %v420_v16 = vld [vmem:[#allocation7 + $0x8] sm:$0xff]   ;;  %v421_v17 = vld [vmem:[#allocation7] sm:$0xff]  }
  0x2b   :  { %v318_v18 = vld [vmem:[%s568_s2] ss:$0 sm:$0xff]  ;;  %s482_s2 = scalar_lea.vmem %s306_s12, 256 }
  0x2c   :  { %358 = vmatpush3.bf16.msra.mxu0 %v406_v2  ;;  %378 = vmatpush3.bf16.msra.mxu1 %v415_v6  ;;  %v328_v28 = vld [vmem:[%s570_s4] ss:$0 sm:$0xff]  ;;  %p483_p1 = scmp.ne.s32.totalorder %s306_s12, %s482_s2  ;;  %p488_p3 = scmp.lt.s32.totalorder %s482_s2, %s482_s2 }
  0x2d   :  { %359 = vmatprep.subr.bf16.mxu0 %v513_v0  ;;  %379 = vmatprep.subr.bf16.mxu1 %v513_v0 }
  0x2e   :  { %p489_p4 = por %p488_p3, %p487_p2 }
  0x30   :  { %360 = vmatpush3.bf16.msra.mxu0 %v407_v3  ;;  %380 = vmatpush3.bf16.msra.mxu1 %v416_v8  ;;  %p490_p5 = pnand %p489_p4, %p483_p1 }
  0x31   :  { %361 = vmatprep.subr.bf16.mxu0 %v513_v0  ;;  %381 = vmatprep.subr.bf16.mxu1 %v513_v0 }
  0x34   :  { %362 = vmatpush3.bf16.msra.mxu0 %v408_v5  ;;  %382 = vmatpush3.bf16.msra.mxu1 %v417_v10 }
  0x35   :  { %363 = vmatprep.subr.bf16.mxu0 %v513_v0  ;;  %383 = vmatprep.subr.bf16.mxu1 %v513_v0 }
  0x38   :  { %364 = vmatpush3.bf16.msra.mxu0 %v409_v7  ;;  %384 = vmatpush3.bf16.msra.mxu1 %v418_v12 }
  0x39   :  { %365 = vmatprep.subr.bf16.mxu0 %v513_v0  ;;  %385 = vmatprep.subr.bf16.mxu1 %v513_v0 }
  0x3c   :  { %366 = vmatpush3.bf16.msra.mxu0 %v410_v9  ;;  %386 = vmatpush3.bf16.msra.mxu1 %v419_v15 }
  0x3d   :  { %367 = vmatprep.subr.bf16.mxu0 %v513_v0  ;;  %387 = vmatprep.subr.bf16.mxu1 %v513_v0 }
  0x40   :  { %368 = vmatpush3.bf16.msra.mxu0 %v411_v11  ;;  %388 = vmatpush3.bf16.msra.mxu1 %v420_v16 }
  0x41   :  { %369 = vmatprep.subr.bf16.mxu0 %v513_v0  ;;  %389 = vmatprep.subr.bf16.mxu1 %v513_v0 }
  0x44   :  { %370 = vmatpush3.bf16.msra.mxu0 %v412_v13  ;;  %390 = vmatpush3.bf16.msra.mxu1 %v421_v17 }
  0x47   :  { %372 = vmatmul.mubr.bf16.vlgmr.msra.gmra.mxu0 %v413_v14 }
 0x107   :  { %v176_v19 = vpop.f32.mrf.mxu0 }
 0x108   :  { %v177_v21 = vadd.f32 %v318_v18, %v176_v19 }
 0x109   :  { %v373_v20 = vpop.f32.mrf.mxu0 }
 0x10a   :  { %v183_v25 = vmax.f32 %v177_v21, 0.0 }
 0x10b   :  { %v179_v22 = vpop.f32.mrf.mxu0 }
 0x10c   :  { %v180_v23 = vadd.f32 %v318_v18, %v179_v22 }
 0x10d   :  { %v374_v24 = vpop.f32.mrf.mxu0 }
 0x10e   :  { %v184_v26 = vmax.f32 %v180_v23, 0.0 }
 0x110   :  { %v185_v27 = vpack.c.bf16 %v184_v26, %v183_v25 }
 0x112   :  { %392 = vmatmul.mubr.bf16.vlgmr.msra.gmra.mxu1 %v185_v27 }
 0x1d2   :  { %v291_v29 = vpop.f32.mrf.mxu1 }
 0x1d3   :  { %v292_v30 = vadd.f32 %v328_v28, %v291_v29 }
 0x1d4   :  { %v393_v31 = vpop.f32.mrf.mxu1 }
 0x1d5   :  { %298 = vst [vmem:[#allocation8] sm:$0xff] %v292_v30 }
 0x1d6   :  { %v294_v32 = vpop.f32.mrf.mxu1 }
 0x1d7   :  { %v295_v33 = vadd.f32 %v328_v28, %v294_v32 }
 0x1d8   :  { %v394_v34 = vpop.f32.mrf.mxu1 }
 0x1d9   :  { %299 = vst [vmem:[#allocation8 + $0x8] sm:$0xff] %v295_v33 }
 0x1da   :  { %493 = shalt.err (!%p490_p5)
}
 0x1db   :  { %s516_s13 = smov 128   ;;  %s517_s4 = smov 8  }
 0x1dc   :  { %311 = dma.vmem_to_hbm [thread:$0]  %s306_s12, 256, %s571_s5, [#allocation4], %s516_s13, %s516_s13, %s517_s4  }
 0x1dd   :  { %506 = dma.done.wait [#allocation4], 256  }
 0x1de   :  { %507 = vsyncadd [#allocation4], 4294967040 }
 0x1df   :  { %315 = vsyncpa [#allocation3], 1 }
 0x1e0   :  { %316 = vsyncpa [#allocation6], 1 }
 0x1e1   :  { %317 = vsyncpa [#allocation4], 1 }

</bundles_post_ra>
